<compile_context>
chip_gen: v7x
topology: tpu7x:2x2x1
jax: 0.10.0
libtpu: 0.0.40
codegen_flags: <defaults>
</compile_context>

<pallas_src>
import functools

import jax
import jax.numpy as jnp
from jax import lax
from jax.experimental import pallas as pl
from jax.experimental.pallas import tpu as pltpu

EPS = 1e-5
LANE = 128
SUBLANE = 8


def _round_up(n, m):
    return (n + m - 1) // m * m


def _cdiv(a, b):
    return (a + b - 1) // b


def _vmem_capacity_bytes():
    """Physical VMEM per core (128 MiB on v5e/v6e, 64 MiB on v7x) with a
    conservative fallback if the query is unavailable."""
    try:
        return int(pltpu.get_tpu_info().vmem_capacity_bytes)
    except Exception:
        return 64 * 1024 * 1024


# --------------------------------------------------------------------------- #
# Single-buffering capability probe
# --------------------------------------------------------------------------- #
_single_buffer_ok = None


def _single_buffering_supported():
    """Grid-invariant inputs gain nothing from the default double buffering;
    pl.Buffered(1) halves their VMEM residency.  Probe once on a tiny kernel
    so an unsupported build falls back to default buffering instead of
    failing to lower the real kernels."""
    global _single_buffer_ok
    if _single_buffer_ok is None:
        try:
            def _k(w_ref, o_ref):
                o_ref[...] = w_ref[...] * 2.0

            out = pl.pallas_call(
                _k,
                out_shape=jax.ShapeDtypeStruct((2 * SUBLANE, LANE), jnp.float32),
                grid=(2,),
                in_specs=[pl.BlockSpec((SUBLANE, LANE), lambda i: (0, 0),
                                       pipeline_mode=pl.Buffered(1))],
                out_specs=pl.BlockSpec((SUBLANE, LANE), lambda i: (i, 0)),
            )(jnp.ones((SUBLANE, LANE), jnp.float32))
            _single_buffer_ok = bool(jnp.allclose(jax.block_until_ready(out), 2.0))
        except Exception:
            _single_buffer_ok = False
    return _single_buffer_ok


def _resident_spec(block_shape):
    """BlockSpec for a grid-invariant input (constant index_map), single
    buffered when the build supports it."""
    ndim = len(block_shape)
    index_map = lambda i, _n=ndim: (0,) * _n
    if _single_buffering_supported():
        return pl.BlockSpec(block_shape, index_map, pipeline_mode=pl.Buffered(1))
    return pl.BlockSpec(block_shape, index_map)


# --------------------------------------------------------------------------- #
# Kernels
# --------------------------------------------------------------------------- #

def _stage1_kernel(x_ref, w1_ref, h_ref, sum_ref, sq_ref):
    """Per B-tile: h = x @ W1^T (MXU, f32 acc) + per-tile sum / sum(h^2)."""
    # Cast x to the MXU compute dtype in VMEM (hidden under the MXU) instead
    # of a separate wrapper-side XLA cast pass over HBM.
    x = x_ref[...].astype(w1_ref.dtype)
    h = lax.dot_general(
        x, w1_ref[...],
        dimension_numbers=(((1,), (1,)), ((), ())),   # contract in_features
        preferred_element_type=jnp.float32)
    h_ref[...] = h.astype(h_ref.dtype)
    # Two direct lane-dense row stores (no (2, C) concat / sublane relayout).
    sum_ref[0] = jnp.sum(h, axis=0, keepdims=True)
    sq_ref[0] = jnp.sum(h * h, axis=0, keepdims=True)


def _stage2_kernel(h_ref, s1_ref, t1_ref, w2_ref, z_ref, sum_ref, sq_ref, *,
                   block_b, batch, padded_batch):
    """Per B-tile: z = ReLU(BN1(h)) @ W2^T + per-tile sum / sum(z^2)."""
    # BN1 folded into a single scale/shift FMA (f32), then ReLU.
    hb = h_ref[...].astype(jnp.float32) * s1_ref[...] + t1_ref[...]
    hb = jnp.maximum(hb, 0.0)
    if padded_batch != batch:
        # Zero padded batch rows so they cannot pollute the layer-2 stats.
        # (tb, 1) column iota broadcast in the select -- no full-tile iota;
        # the residual select is filler under the MXU push below.
        row = pl.program_id(0) * block_b + lax.broadcasted_iota(
            jnp.int32, (block_b, 1), 0)
        hb = jnp.where(row < batch, hb, 0.0)
    z = lax.dot_general(
        hb.astype(w2_ref.dtype), w2_ref[...],
        dimension_numbers=(((1,), (1,)), ((), ())),   # contract hidden_features
        preferred_element_type=jnp.float32)
    # Stats from the f32 accumulator; store z narrow (bf16 in production).
    z_ref[...] = z.astype(z_ref.dtype)
    sum_ref[0] = jnp.sum(z, axis=0, keepdims=True)
    sq_ref[0] = jnp.sum(z * z, axis=0, keepdims=True)


# --------------------------------------------------------------------------- #
# Wrapper
# --------------------------------------------------------------------------- #

def prepare_params(w1, gamma1, beta1, w2, gamma2, beta2,
                   compute_dtype=jnp.bfloat16):
    """One-time parameter prep (runs once at model init, not per call).

    Pads hidden/output channel dims to multiples of 128 (lane-dense stores,
    full MXU tiles) and casts the weights to the MXU compute dtype.  Weights
    remain in torch (out_features, in_features) layout -- no transposes.
    Padded channels carry gamma = beta = 0 so they contribute exact zeros.
    """
    hid, in_f = w1.shape
    out, hid2 = w2.shape
    assert hid2 == hid
    hid_p = _round_up(hid, LANE)
    out_p = _round_up(out, LANE)

    w1_p = jnp.zeros((hid_p, in_f), compute_dtype).at[:hid, :].set(
        w1.astype(compute_dtype))
    w2_p = jnp.zeros((out_p, hid_p), compute_dtype).at[:out, :hid].set(
        w2.astype(compute_dtype))
    g1 = jnp.zeros((1, hid_p), jnp.float32).at[0, :hid].set(
        gamma1.astype(jnp.float32))
    b1 = jnp.zeros((1, hid_p), jnp.float32).at[0, :hid].set(
        beta1.astype(jnp.float32))
    g2 = jnp.zeros((1, out_p), jnp.float32).at[0, :out].set(
        gamma2.astype(jnp.float32))
    b2 = jnp.zeros((1, out_p), jnp.float32).at[0, :out].set(
        beta2.astype(jnp.float32))
    return dict(w1=w1_p, g1=g1, b1=b1, w2=w2_p, g2=g2, b2=b2,
                out_features=out)


def projection_head(x, params, *, block_b=512):
    """x: [B, in_features] (any float dtype); params from prepare_params."""
    B, in_f = x.shape
    w1, w2 = params["w1"], params["w2"]
    hid_p = w1.shape[0]
    out_p = w2.shape[0]
    out_f = params["out_features"]
    cdt = w1.dtype                                    # MXU compute dtype
    x_isz = jnp.dtype(x.dtype).itemsize
    c_isz = jnp.dtype(cdt).itemsize

    cap = _vmem_capacity_bytes()

    def _need(tb):
        # Conservative (assumes double buffering everywhere) VMEM estimate.
        s1 = (2 * tb * in_f * x_isz            # x tiles
              + 2 * hid_p * in_f * c_isz       # w1
              + 2 * tb * hid_p * c_isz         # h tiles
              + 8 * hid_p * 4)                 # stats rows
        s2 = (2 * tb * hid_p * c_isz           # h tiles
              + 4 * hid_p * 4                  # scale/shift rows
              + 2 * out_p * hid_p * c_isz      # w2
              + 2 * tb * out_p * c_isz         # z tiles
              + 8 * out_p * 4)                 # stats rows
        return max(s1, s2)

    # --- generation-aware tile selection ------------------------------------
    tb = max(_round_up(min(block_b, _round_up(B, SUBLANE)), SUBLANE), SUBLANE)
    while tb > SUBLANE and _need(tb) > 0.7 * cap:
        tb = max(_round_up(tb // 2, SUBLANE), SUBLANE)
    nt = _cdiv(B, tb)
    if nt > 1 and nt % 2 == 1:
        # Prefer an even tile count (keeps both v7x TensorCores busy every
        # step) by SHRINKING the tile, never by adding a wasted tile.
        tb2 = max(_round_up(_cdiv(B, nt + 1), SUBLANE), SUBLANE)
        if _cdiv(B, tb2) % 2 == 0:
            tb = tb2
            nt = _cdiv(B, tb)
    b_pad = nt * tb

    # x stays in its native dtype (no wrapper cast); only pad rows if ragged.
    xq = x
    if b_pad != B:
        xq = jnp.pad(x, ((0, b_pad - B), (0, 0)))     # zero rows: inert in stats

    vmem_limit = int(min(cap - (2 << 20), max(2 * _need(tb), 32 << 20)))
    vmem_limit = max(vmem_limit, 16 << 20)
    cparams = pltpu.CompilerParams(
        dimension_semantics=("parallel",),            # B tiles are independent
        vmem_limit_bytes=vmem_limit)

    # ---- stage 1: h = x @ W1^T, per-tile sum / sum(h^2) --------------------
    h, s1_sum, s1_sq = pl.pallas_call(
        _stage1_kernel,
        out_shape=(jax.ShapeDtypeStruct((b_pad, hid_p), cdt),
                   jax.ShapeDtypeStruct((nt, 1, hid_p), jnp.float32),
                   jax.ShapeDtypeStruct((nt, 1, hid_p), jnp.float32)),
        grid=(nt,),
        in_specs=[pl.BlockSpec((tb, in_f), lambda i: (i, 0)),
                  _resident_spec((hid_p, in_f))],
        out_specs=(pl.BlockSpec((tb, hid_p), lambda i: (i, 0)),
                   pl.BlockSpec((1, 1, hid_p), lambda i: (i, 0, 0)),
                   pl.BlockSpec((1, 1, hid_p), lambda i: (i, 0, 0))),
        compiler_params=cparams,
    )(xq, w1)

    sum1 = jnp.sum(s1_sum, axis=(0, 1))               # (hid_p,)
    sq1 = jnp.sum(s1_sq, axis=(0, 1))
    mean1 = sum1 / B
    var1 = jnp.maximum(sq1 / B - mean1 * mean1, 0.0)
    scale1 = params["g1"] * lax.rsqrt(var1 + EPS)     # (1, hid_p)
    shift1 = params["b1"] - mean1 * scale1            # (1, hid_p)

    # ---- stage 2: z = ReLU(BN1(h)) @ W2^T, per-tile sum / sum(z^2) ---------
    k2 = functools.partial(_stage2_kernel, block_b=tb, batch=B,
                           padded_batch=b_pad)
    z, s2_sum, s2_sq = pl.pallas_call(
        k2,
        out_shape=(jax.ShapeDtypeStruct((b_pad, out_p), cdt),
                   jax.ShapeDtypeStruct((nt, 1, out_p), jnp.float32),
                   jax.ShapeDtypeStruct((nt, 1, out_p), jnp.float32)),
        grid=(nt,),
        in_specs=[pl.BlockSpec((tb, hid_p), lambda i: (i, 0)),
                  _resident_spec((1, hid_p)),
                  _resident_spec((1, hid_p)),
                  _resident_spec((out_p, hid_p))],
        out_specs=(pl.BlockSpec((tb, out_p), lambda i: (i, 0)),
                   pl.BlockSpec((1, 1, out_p), lambda i: (i, 0, 0)),
                   pl.BlockSpec((1, 1, out_p), lambda i: (i, 0, 0))),
        compiler_params=cparams,
    )(h, scale1, shift1, w2)

    sum2 = jnp.sum(s2_sum, axis=(0, 1))
    sq2 = jnp.sum(s2_sq, axis=(0, 1))
    mean2 = sum2 / B
    var2 = jnp.maximum(sq2 / B - mean2 * mean2, 0.0)
    scale2 = params["g2"][0] * lax.rsqrt(var2 + EPS)  # (out_p,)
    shift2 = params["b2"][0] - mean2 * scale2         # (out_p,)

    # ---- BN2 + slice epilogue: plain JAX so XLA fuses FMA + slice + cast ----
    zv = z[:B, :out_f].astype(jnp.float32)
    out = zv * scale2[:out_f] + shift2[:out_f]
    return out.astype(x.dtype)


# --------------------------------------------------------------------------- #
# Pure-JAX reference (same forward pass, training-mode BN, f32)
# --------------------------------------------------------------------------- #

def reference(x, w1, gamma1, beta1, w2, gamma2, beta2):
    h = x @ w1.T
    m1 = h.mean(0)
    v1 = ((h - m1) ** 2).mean(0)
    h = (h - m1) / jnp.sqrt(v1 + EPS) * gamma1 + beta1
    h = jnp.maximum(h, 0.0)
    z = h @ w2.T
    m2 = z.mean(0)
    v2 = ((z - m2) ** 2).mean(0)
    z = (z - m2) / jnp.sqrt(v2 + EPS) * gamma2 + beta2
    return z


if __name__ == "__main__":
    B, IN_F, HID_F, OUT_F = 8, 32, 64, 16

    key = jax.random.PRNGKey(0)
    k_x, k_w1, k_w2, k_g1, k_b1, k_g2, k_b2, k_x2 = jax.random.split(key, 8)

    x = jax.random.normal(k_x, (B, IN_F), dtype=jnp.float32)
    # torch nn.Linear weight layout: (out_features, in_features)
    w1 = jax.random.normal(k_w1, (HID_F, IN_F), dtype=jnp.float32) * 0.1
    w2 = jax.random.normal(k_w2, (OUT_F, HID_F), dtype=jnp.float32) * 0.1
    gamma1 = 1.0 + 0.1 * jax.random.normal(k_g1, (HID_F,), dtype=jnp.float32)
    beta1 = 0.1 * jax.random.normal(k_b1, (HID_F,), dtype=jnp.float32)
    gamma2 = 1.0 + 0.1 * jax.random.normal(k_g2, (OUT_F,), dtype=jnp.float32)
    beta2 = 0.1 * jax.random.normal(k_b2, (OUT_F,), dtype=jnp.float32)

    ref = reference(x, w1, gamma1, beta1, w2, gamma2, beta2)

    # --- exactness check: f32 compute path ---------------------------------
    params_f32 = prepare_params(w1, gamma1, beta1, w2, gamma2, beta2,
                                compute_dtype=jnp.float32)
    out_f32 = jax.block_until_ready(projection_head(x, params_f32))
    assert out_f32.shape == (B, OUT_F)
    assert jnp.allclose(out_f32, ref, atol=1e-4, rtol=1e-4), (
        f"f32 max abs err {jnp.max(jnp.abs(out_f32 - ref))}")

    # --- production path: bf16 weights/activations, f32 accumulation -------
    params_bf16 = prepare_params(w1, gamma1, beta1, w2, gamma2, beta2,
                                 compute_dtype=jnp.bfloat16)
    out_bf16 = jax.block_until_ready(projection_head(x, params_bf16))
    assert out_bf16.shape == (B, OUT_F)
    assert jnp.allclose(out_bf16, ref, atol=1e-1, rtol=1e-1), (
        f"bf16 max abs err {jnp.max(jnp.abs(out_bf16 - ref))}")

    # --- multi-tile + padded-batch path (exercises masking / accumulation) --
    B2 = 40
    x2 = jax.random.normal(k_x2, (B2, IN_F), dtype=jnp.float32)
    ref2 = reference(x2, w1, gamma1, beta1, w2, gamma2, beta2)
    out2 = jax.block_until_ready(projection_head(x2, params_f32, block_b=16))
    assert out2.shape == (B2, OUT_F)
    assert jnp.allclose(out2, ref2, atol=1e-4, rtol=1e-4), (
        f"tiled max abs err {jnp.max(jnp.abs(out2 - ref2))}")

    print("KERNEL_OK")
</pallas_src>

<mosaic_0001>
module attributes {stable_mosaic.version = 11 : i64} {
  func.func @_k(%arg0: i32, %arg1: memref<8x128xf32, #tpu.memory_space<vmem>>, %arg2: memref<8x128xf32, #tpu.memory_space<vmem>>) attributes {dimension_semantics = [#tpu.dimension_semantics<arbitrary>], iteration_bounds = array<i64: 2>, scalar_prefetch = 0 : i64, scratch_operands = 0 : i64, tpu.core_type = #tpu.core_type<tc>, window_params = [{pipeline_mode = #tpu.pipeline_mode<synchronous>, transform_indices = @transform_0, window_bounds = array<i64: 8, 128>}, {transform_indices = @transform_1, window_bounds = array<i64: 8, 128>}]} {
    %c0 = arith.constant 0 : index
    %c0_0 = arith.constant 0 : index
    %0 = vector.load %arg1[%c0, %c0_0] : memref<8x128xf32, #tpu.memory_space<vmem>>, vector<8x128xf32>
    %cst = arith.constant 2.000000e+00 : f32
    %1 = vector.broadcast %cst : f32 to vector<8x128xf32>
    %2 = arith.mulf %0, %1 : vector<8x128xf32>
    %c0_1 = arith.constant 0 : index
    %c0_2 = arith.constant 0 : index
    %3 = vector.load %arg2[%c0_1, %c0_2] : memref<8x128xf32, #tpu.memory_space<vmem>>, vector<8x128xf32>
    tpu.vector_store %arg2[%c0_1, %c0_2], %2 {strides = array<i32>} : memref<8x128xf32, #tpu.memory_space<vmem>>, vector<8x128xf32>,
    return
  }
  func.func @transform_0(%arg0: i32) -> (i32, i32) {
    %c0_i32 = arith.constant 0 : i32
    %c0_i32_0 = arith.constant 0 : i32
    %c0_i32_1 = arith.constant 0 : i32
    return %c0_i32, %c0_i32_0 : i32, i32
  }
  func.func @transform_1(%arg0: i32) -> (i32, i32) {
    %c0_i32 = arith.constant 0 : i32
    %c0_i32_0 = arith.constant 0 : i32
    return %arg0, %c0_i32 : i32, i32
  }
}

module attributes {stable_mosaic.version = 11 : i64} {
  func.func @_stage1_kernel(%arg0: i32, %arg1: memref<8x32xf32, #tpu.memory_space<vmem>>, %arg2: memref<128x32xf32, #tpu.memory_space<vmem>>, %arg3: memref<8x128xf32, #tpu.memory_space<vmem>>, %arg4: memref<1x1x128xf32, #tpu.memory_space<vmem>>, %arg5: memref<1x1x128xf32, #tpu.memory_space<vmem>>) attributes {dimension_semantics = [#tpu.dimension_semantics<parallel>], iteration_bounds = array<i64: 1>, scalar_prefetch = 0 : i64, scratch_operands = 0 : i64, tpu.core_type = #tpu.core_type<tc>, window_params = [{transform_indices = @transform_0, window_bounds = array<i64: 8, 32>}, {pipeline_mode = #tpu.pipeline_mode<synchronous>, transform_indices = @transform_1, window_bounds = array<i64: 128, 32>}, {transform_indices = @transform_2, window_bounds = array<i64: 8, 128>}, {transform_indices = @transform_3, window_bounds = array<i64: 1, 1, 128>}, {transform_indices = @transform_4, window_bounds = array<i64: 1, 1, 128>}]} {
    %c0 = arith.constant 0 : index
    %c0_0 = arith.constant 0 : index
    %0 = vector.load %arg1[%c0, %c0_0] : memref<8x32xf32, #tpu.memory_space<vmem>>, vector<8x32xf32>
    %c0_1 = arith.constant 0 : index
    %c0_2 = arith.constant 0 : index
    %1 = vector.load %arg2[%c0_1, %c0_2] : memref<128x32xf32, #tpu.memory_space<vmem>>, vector<128x32xf32>
    %cst = arith.constant dense<0.000000e+00> : vector<8x128xf32>
    %2 = tpu.matmul %0, %1, %cst {dimension_numbers = #tpu.dot_dimension_numbers<[1], [1], [0], [0], [0, 0, 1, 0], [], []>} : vector<8x32xf32>, vector<128x32xf32>, vector<8x128xf32> -> vector<8x128xf32>
    %c0_3 = arith.constant 0 : index
    %c0_4 = arith.constant 0 : index
    %3 = vector.load %arg3[%c0_3, %c0_4] : memref<8x128xf32, #tpu.memory_space<vmem>>, vector<8x128xf32>
    tpu.vector_store %arg3[%c0_3, %c0_4], %2 {strides = array<i32>} : memref<8x128xf32, #tpu.memory_space<vmem>>, vector<8x128xf32>,
    %cst_5 = arith.constant dense<0.000000e+00> : vector<128xf32>
    %4 = vector.multi_reduction <add>, %2, %cst_5 [0] : vector<8x128xf32> to vector<128xf32>
    %5 = vector.shape_cast %4 : vector<128xf32> to vector<1x128xf32>
    %c0_6 = arith.constant 0 : index
    %c0_7 = arith.constant 0 : index
    %c0_8 = arith.constant 0 : index
    %6 = vector.load %arg4[%c0_6, %c0_7, %c0_8] : memref<1x1x128xf32, #tpu.memory_space<vmem>>, vector<1x1x128xf32>
    %7 = vector.shape_cast %6 : vector<1x1x128xf32> to vector<1x128xf32>
    %8 = vector.shape_cast %5 : vector<1x128xf32> to vector<1x1x128xf32>
    tpu.vector_store %arg4[%c0_6, %c0_7, %c0_8], %8 {strides = array<i32>} : memref<1x1x128xf32, #tpu.memory_space<vmem>>, vector<1x1x128xf32>,
    %9 = arith.mulf %2, %2 : vector<8x128xf32>
    %cst_9 = arith.constant dense<0.000000e+00> : vector<128xf32>
    %10 = vector.multi_reduction <add>, %9, %cst_9 [0] : vector<8x128xf32> to vector<128xf32>
    %11 = vector.shape_cast %10 : vector<128xf32> to vector<1x128xf32>
    %c0_10 = arith.constant 0 : index
    %c0_11 = arith.constant 0 : index
    %c0_12 = arith.constant 0 : index
    %12 = vector.load %arg5[%c0_10, %c0_11, %c0_12] : memref<1x1x128xf32, #tpu.memory_space<vmem>>, vector<1x1x128xf32>
    %13 = vector.shape_cast %12 : vector<1x1x128xf32> to vector<1x128xf32>
    %14 = vector.shape_cast %11 : vector<1x128xf32> to vector<1x1x128xf32>
    tpu.vector_store %arg5[%c0_10, %c0_11, %c0_12], %14 {strides = array<i32>} : memref<1x1x128xf32, #tpu.memory_space<vmem>>, vector<1x1x128xf32>,
    return
  }
  func.func @transform_0(%arg0: i32) -> (i32, i32) {
    %c0_i32 = arith.constant 0 : i32
    %c0_i32_0 = arith.constant 0 : i32
    return %arg0, %c0_i32 : i32, i32
  }
  func.func @transform_1(%arg0: i32) -> (i32, i32) {
    %c0_i32 = arith.constant 0 : i32
    %c0_i32_0 = arith.constant 0 : i32
    %c0_i32_1 = arith.constant 0 : i32
    return %c0_i32, %c0_i32_0 : i32, i32
  }
  func.func @transform_2(%arg0: i32) -> (i32, i32) {
    %c0_i32 = arith.constant 0 : i32
    %c0_i32_0 = arith.constant 0 : i32
    return %arg0, %c0_i32 : i32, i32
  }
  func.func @transform_3(%arg0: i32) -> (i32, i32, i32) {
    %c0_i32 = arith.constant 0 : i32
    %c0_i32_0 = arith.constant 0 : i32
    %c0_i32_1 = arith.constant 0 : i32
    return %arg0, %c0_i32, %c0_i32_0 : i32, i32, i32
  }
  func.func @transform_4(%arg0: i32) -> (i32, i32, i32) {
    %c0_i32 = arith.constant 0 : i32
    %c0_i32_0 = arith.constant 0 : i32
    %c0_i32_1 = arith.constant 0 : i32
    return %arg0, %c0_i32, %c0_i32_0 : i32, i32, i32
  }
}

</mosaic_0001>

<bundles_post_ra>
// kernel: tpu_custom_call.1
= control target key start
LH: loop header
LB: loop body
LE: loop exit
PB: predicated region body
PF: predicated region fallthrough
CT: control target
= control target key end

     0   :  { %6 = vsyncpa [#allocation3], 0  ;;  %s482_s0 = inlined_call_operand.hbm [shape: f32[8,128], index: 0, kind: input, shape index: {}]   ;;  %s483_s1 = inlined_call_operand.hbm [shape: f32[16,128], index: 1, kind: output, shape index: {}]  }
   0x1   :  { %7 = vsyncpa [#allocation4], 0 }
   0x2   :  { %9 = vsyncpa [#allocation4 + $0x1], 0  ;;  %s352_s6 = smov 0   ;;  %s354_s7 = smov 0  }
   0x3   :  { %s356_s8 = smov 0   ;;  %s358_s9 = smov 0  }
   0x4 LB: > { %s373_s10 = sadd.s32 4294967295, %s338_s9   ;;  %s184_s11 = sadd.s32 4294967294, %s338_s9   ;;  %s338_s9 = sphi %s358_s9, %s499_s9   ;;  %s334_s8 = sphi %s356_s8, %s498_s8   ;;  %s330_s7 = sphi %s354_s7, %s497_s7   ;;  %s326_s6 = sphi %s352_s6, %s496_s6  }
   0x5   : > { %s377_s12 = sadd.s32 1, %s338_s9   ;;  %s43_s13 = sadd.s32 1, %s334_s8 }
   0x6   : > { %s40_s14 = ssub.s32 %s338_s9, %s377_s12  ;;  %p53_p0 = scmp.ne.s32.totalorder %s334_s8, %s330_s7 }
   0x7   : > { %p41_p1 = scmp.eq.s32.totalorder %s40_s14, 0  ;;  %p54_p2 = scmp.eq.s32.totalorder %s373_s10, 1 }
   0x8   : > { %p59_p3 = scmp.ne.s32.totalorder %s330_s7, %s326_s6  ;;  %p60_p4 = scmp.eq.s32.totalorder %s184_s11, 1 }
   0x9   : > { %s388_s15 = scalar_select %p41_p1, %s334_s8, %s43_s13  }
   0xa   : > { %p390_p5 = por %p54_p2, %p53_p0  ;;  %p394_p6 = por %p60_p4, %p59_p3 }
   0xb   : > { %p185_p7 = scmp.ge.s32.totalorder %s338_s9, 1  ;;  %p67_p8 = scmp.lt.s32.totalorder %s338_s9, 3 }
   0xc   : > { %s487_s16 = scalar_select %p390_p5, 1, 0 }
   0xd   : > { %s488_s17 = scalar_select %p394_p6, 1, 0 }
   0xe   : > { %p484_p9 = scmp.eq.s32.totalorder %s373_s10, 0  ;;  %p401_p10 = pnand %p185_p7, %p67_p8 }
   0xf   : > { %s340_s19 = smov [#allocation2]   ;;  %s244_s24 = scalar_lea.hbm %s482_s0, 128 }
  0x10   : > { %s489_s18 = scalar_select %p401_p10, 1, 0 }
  0x11   : > { %s80_s20 = sshll.u32 %s340_s19, 4  ;;  %p200_p11 = pneg %p401_p10  ;;  %s81_s20 = int_to_ptr.vmem [resolvable:$true] %s80_s20 }
  0x12   : > { %p245_p13 = scmp.ne.s32.totalorder %s482_s0, %s244_s24  ;;  %p251_p3 = scmp.lt.u32.totalorder %s244_s24, %s482_s0 }
  0x13   : > { %p409_p12 = pnand %p484_p9, %p200_p11 }
  0x15   : > { %p246_p0 = pneg %p409_p12 }
  0x17   : > { %p247_p1 = pnand %p246_p0, %p245_p13 }
  0x19   : > { %p248_p2 = pneg %p247_p1 }
  0x1b   : > { %p253_p4 = pnand %p251_p3, %p248_p2 }
  0x1d   : > { %256 = shalt.err (!%p253_p4)
}
  0x1e   : > { %s257_s29 = scalar_lea.vmem %s81_s20, 128  ;;  %p265_p9 = scmp.lt.s32.totalorder %s81_s20, %s81_s20 }
  0x1f   : > { %p258_p7 = scmp.ne.s32.totalorder %s81_s20, %s257_s29  ;;  %p266_p6 = scmp.lt.s32.totalorder %s257_s29, %s257_s29 }
  0x21   : > { %p260_p8 = pnand %p258_p7, %p246_p0  ;;  %p267_p5 = por %p266_p6, %p265_p9 }
  0x23   : > { %p261_p11 = pneg %p260_p8 }
  0x25   : > { %p268_p10 = pnand %p267_p5, %p261_p11 }
  0x27   : > { %271 = shalt.err (!%p268_p10)
}
  0x28   : > { %203 = dma.hbm_to_vmem [thread:$0]  (!%p409_p12), %s482_s0, 128, %s81_s20, [#allocation3]  }
  0x29   : > { %p491_p13 = scmp.ne.s32.totalorder %s489_s18, 0 }
  0x2a   : > { %p492_p1 = scmp.eq.s32.totalorder (!%p491_p13), %s373_s10, 0 }
  0x2b   : > { %93 = sbr.rel (%p491_p13) target bundleno = 77 (0x4d), region = 24 }
  0x32   : > { %317 = dma.done.wait (%p492_p1), [#allocation3], 128   ;;  %p493_p0 = pmov %p492_p1 }
  0x33   : > { %s105_s3 = sand.u32 1, %s330_s7   ;;  %s191_s13 = sshll.u32 %s373_s10, 7  ;;  %v108_v0 = vld [vmem:[#allocation2] sm:$0xff] }
  0x34   : > { %319 = vsyncadd (%p493_p0), [#allocation3], 4294967168  ;;  %s189_s4 = sshll.u32 %s105_s3, 3  ;;  %v109_v1 = vmul.f32 2.0, %v108_v0  ;;  %s442_s19 = scalar_lea.hbm %s483_s1, %s191_s13 }
  0x35   : > { %s107_s5 = scalar_lea.vmem [#allocation5], %s189_s4  ;;  %s112_s20 = scalar_lea.sflag [#allocation4], %s105_s3 }
  0x36   : > { %s125_s11 = sshll.u32 %s107_s5, 4  ;;  %110 = vst [vmem:[%s107_s5] sm:$0xff] %v109_v1  ;;  %p494_p6 = scmp.ne.s32.totalorder %s487_s16, 0  ;;  %s437_s11 = int_to_ptr.vmem [resolvable:$true] %s125_s11 }
  0x37   : > { %s272_s21 = scalar_lea.vmem %s437_s11, 128  ;;  %s341_s10 = smov [#allocation5]  }
  0x38   : > { %p273_p5 = scmp.ne.s32.totalorder %s437_s11, %s272_s21  ;;  %s276_s22 = sshll.u32 %s341_s10, 4  ;;  %s277_s22 = int_to_ptr.vmem [resolvable:$false] %s276_s22 }
  0x39   : > { %s278_s23 = scalar_lea.vmem %s277_s22, 256  ;;  %p279_p12 = scmp.lt.s32.totalorder %s437_s11, %s277_s22 }
  0x3a   : > { %p274_p9 = pnand %p273_p5, %p494_p6  ;;  %p280_p2 = scmp.lt.s32.totalorder %s278_s23, %s272_s21 }
  0x3c   : > { %p275_p10 = pneg %p274_p9  ;;  %p281_p3 = por %p280_p2, %p279_p12 }
  0x3e   : > { %p282_p4 = pnand %p281_p3, %p275_p10 }
  0x40   : > { %285 = shalt.err (!%p282_p4)
}
  0x41   : > { %s286_s24 = scalar_lea.hbm %s442_s19, 128  ;;  %s290_s27 = scalar_lea.hbm %s483_s1, 256 }
  0x42   : > { %p287_p7 = scmp.ne.s32.totalorder %s442_s19, %s286_s24  ;;  %p291_p13 = scmp.lt.u32.totalorder %s442_s19, %s483_s1 }
  0x43   : > { %p292_p1 = scmp.lt.u32.totalorder %s290_s27, %s286_s24  ;;  %p294_p5 = scmp.lt.u32.totalorder %s286_s24, %s442_s19 }
  0x44   : > { %p288_p8 = pnand %p287_p7, %p494_p6 }
  0x45   : > { %p293_p0 = por %p292_p1, %p291_p13 }
  0x46   : > { %p289_p11 = pneg %p288_p8 }
  0x47   : > { %p295_p9 = por %p294_p5, %p293_p0 }
  0x49   : > { %p296_p10 = pnand %p295_p9, %p289_p11 }
  0x4b   : > { %299 = shalt.err (!%p296_p10)
}
  0x4c   : > { %198 = dma.vmem_to_hbm [thread:$0]  (%p494_p6), %s437_s11, 128, %s442_s19, %s112_s20  }
  0x4d PF: > { %p210_p12 = scmp.ge.s32.totalorder %s338_s9, 2  ;;  %s137_s30 = sand.u32 1, %s326_s6  }
  0x4e   : > { %p495_p2 = scmp.ne.s32.totalorder %s488_s17, 0  ;;  %s138_s2 = scalar_lea.sflag [#allocation4], %s137_s30 }
  0x50   : > { %p205_p3 = pnand %p210_p12, %p495_p2 }
  0x52   : > { %321 = dma.done.wait (!%p205_p3), %s138_s2, 128  }
  0x53   : > { %323 = vsyncadd (!%p205_p3), %s138_s2, 4294967168  ;;  %p12_p4 = scmp.ge.s32.totalorder %s377_s12, 4   ;;  %s496_s6 = smov %s330_s7 }
  0x54   : > { %s497_s7 = smov %s334_s8  ;;  %s498_s8 = smov %s388_s15 }
  0x55   : > { %s499_s9 = smov %s377_s12  ;;  %14 = sbr.rel (!%p12_p4) target bundleno = 4 (0x4), region = 61 }
  0x5c   :  { %143 = vsyncpa [#allocation3], 1 }
  0x5d   :  { %145 = vsyncpa [#allocation3 + $0x1], 1 }
  0x5e   :  { %146 = vsyncpa [#allocation4], 1 }
  0x5f   :  { %148 = vsyncpa [#allocation4 + $0x1], 1 }

// kernel: tpu_custom_call.1
= control target key start
LH: loop header
LB: loop body
LE: loop exit
PB: predicated region body
PF: predicated region fallthrough
CT: control target
= control target key end

     0   :  { %10 = vsyncpa [#allocation3], 0  ;;  %vm33_vm0 = vcmask 261120   ;;  %v389_v2 = vmov 0.0|0.0   ;;  %vm390_vm2 = vmmov 0   ;;  %v391_v5 = vmov 0.0   ;;  %s538_s0 = inlined_call_operand.vmem [shape: f32[8,32], index: 0, kind: input, shape index: {}]   ;;  %s539_s1 = inlined_call_operand.vmem [shape: f32[128,32], index: 1, kind: input, shape index: {}]   ;;  %s540_s2 = inlined_call_operand.hbm [shape: f32[8,128], index: 2, kind: output, shape index: {0}]   ;;  %s541_s3 = inlined_call_operand.hbm [shape: f32[1,1,128], index: 3, kind: output, shape index: {1}]   ;;  %s542_s4 = inlined_call_operand.hbm [shape: f32[1,1,128], index: 4, kind: output, shape index: {2}]  }
   0x1   :  { %v17_v0 = vld [vmem:[%s539_s1] sm:$0xff]  ;;  %v18_v1 = vld [vmem:[%s539_s1 + $0x8] sm:$0xff]  ;;  %281 = vmatprep.subr.bf16.mxu0 %v389_v2  ;;  %vm428_vm1 = vmpackc.low %vm33_vm0, %vm33_vm0  ;;  %278 = vmatprep.mubr.msk.f32.mxu0 %vm390_vm2, %v391_v5 }
   0x2   :  { %v282_v3 = vpack.c.bf16 %v18_v1, %v17_v0  ;;  %v19_v6 = vld [vmem:[%s539_s1 + $0x10] sm:$0xff]  ;;  %v20_v7 = vld [vmem:[%s539_s1 + $0x18] sm:$0xff] }
   0x4   :  { %284 = vmatpush3.bf16.xpose.msk.msra.mxu0 %vm428_vm1, %v282_v3 }
   0x5   :  { %285 = vmatprep.subr.bf16.mxu0 %v389_v2 }
   0x6   :  { %11 = vsyncpa [#allocation5], 0  ;;  %v286_v8 = vpack.c.bf16 %v20_v7, %v19_v6  ;;  %v21_v9 = vld [vmem:[%s539_s1 + $0x20] sm:$0xff]  ;;  %v22_v10 = vld [vmem:[%s539_s1 + $0x28] sm:$0xff]  ;;  %s392_s23 = smov [#allocation2]  }
   0x7   :  { %v290_v11 = vpack.c.bf16 %v22_v10, %v21_v9  ;;  %v23_v12 = vld [vmem:[%s539_s1 + $0x30] sm:$0xff]  ;;  %v24_v13 = vld [vmem:[%s539_s1 + $0x38] sm:$0xff]  ;;  %v25_v15 = vld [vmem:[%s539_s1 + $0x40] sm:$0xff]  ;;  %s177_s24 = sshll.u32 %s392_s23, 4  ;;  %s178_s24 = int_to_ptr.vmem [resolvable:$true] %s177_s24 }
   0x8   :  { %v294_v14 = vpack.c.bf16 %v24_v13, %v23_v12  ;;  %v26_v16 = vld [vmem:[%s539_s1 + $0x48] sm:$0xff]  ;;  %v27_v18 = vld [vmem:[%s539_s1 + $0x50] sm:$0xff]  ;;  %v28_v19 = vld [vmem:[%s539_s1 + $0x58] sm:$0xff]  ;;  %s319_s25 = scalar_lea.vmem %s178_s24, 128  ;;  %p324_p1 = scmp.lt.s32.totalorder %s178_s24, %s178_s24 }
   0x9   :  { %v298_v17 = vpack.c.bf16 %v26_v16, %v25_v15  ;;  %v302_v20 = vpack.c.bf16 %v28_v19, %v27_v18  ;;  %v29_v21 = vld [vmem:[%s539_s1 + $0x60] sm:$0xff]  ;;  %v30_v22 = vld [vmem:[%s539_s1 + $0x68] sm:$0xff]  ;;  %v31_v24 = vld [vmem:[%s539_s1 + $0x70] sm:$0xff]  ;;  %p320_p0 = scmp.ne.s32.totalorder %s178_s24, %s319_s25  ;;  %p325_p2 = scmp.lt.s32.totalorder %s319_s25, %s319_s25 }
   0xa   :  { %v306_v23 = vpack.c.bf16 %v30_v22, %v29_v21  ;;  %v32_v25 = vld [vmem:[%s539_s1 + $0x78] sm:$0xff]  ;;  %v16_v27 = vld [vmem:[%s538_s0] sm:$0xff] }
   0xb   :  { %v310_v26 = vpack.c.bf16 %v32_v25, %v31_v24  ;;  %p326_p3 = por %p325_p2, %p324_p1 }
   0xc   :  { %288 = vmatpush3.bf16.xpose.msk.msra.mxu0 %vm428_vm1, %v286_v8 }
   0xd   :  { %289 = vmatprep.subr.bf16.mxu0 %v389_v2  ;;  %p327_p4 = pnand %p326_p3, %p320_p0 }
  0x14   :  { %292 = vmatpush3.bf16.xpose.msk.msra.mxu0 %vm428_vm1, %v290_v11 }
  0x15   :  { %293 = vmatprep.subr.bf16.mxu0 %v389_v2 }
  0x1c   :  { %296 = vmatpush3.bf16.xpose.msk.msra.mxu0 %vm428_vm1, %v294_v14 }
  0x1d   :  { %297 = vmatprep.subr.bf16.mxu0 %v389_v2 }
  0x24   :  { %300 = vmatpush3.bf16.xpose.msk.msra.mxu0 %vm428_vm1, %v298_v17 }
  0x25   :  { %301 = vmatprep.subr.bf16.mxu0 %v389_v2 }
  0x2c   :  { %304 = vmatpush3.bf16.xpose.msk.msra.mxu0 %vm428_vm1, %v302_v20 }
  0x2d   :  { %305 = vmatprep.subr.bf16.mxu0 %v389_v2 }
  0x34   :  { %308 = vmatpush3.bf16.xpose.msk.msra.mxu0 %vm428_vm1, %v306_v23 }
  0x35   :  { %309 = vmatprep.subr.bf16.mxu0 %v389_v2 }
  0x3c   :  { %312 = vmatpush3.bf16.xpose.msk.msra.mxu0 %vm428_vm1, %v310_v26 }
  0x43   :  { %279 = vmatmul.mubr.msk.f32.vlgmr.msra.gmra.mrb[0].mxu0 %vm33_vm0, %v16_v27 }
 0x116   :  { %v151_v28 = vpop.f32.mrb[0].mxu0 }
 0x117   :  { %v156_v29 = vrot.slane %v151_v28, 4  ;;  %v163_v30 = vmul.f32 %v151_v28, %v151_v28  ;;  %155 = vst [vmem:[#allocation2] sm:$0xff] %v151_v28  ;;  %v280_v31 = vpop.f32.mrb[1].mxu0 }
 0x118   :  { %330 = shalt.err (!%p327_p4)
}
 0x119   :  { %s331_s0 = scalar_lea.hbm %s540_s2, 128 }
 0x11a   :  { %p332_p5 = scmp.ne.s32.totalorder %s540_s2, %s331_s0  ;;  %p335_p6 = scmp.lt.u32.totalorder %s331_s0, %s540_s2 }
 0x11c   :  { %p337_p7 = pnand %p335_p6, %p332_p5 }
 0x11e   :  { %340 = shalt.err (!%p337_p7)
}
 0x11f   :  { %180 = dma.vmem_to_hbm [thread:$0]  %s178_s24, 128, %s540_s2, [#allocation3]   ;;  %v157_v32 = vadd.f32 %v156_v29, %v151_v28  ;;  %v164_v33 = vrot.slane %v163_v30, 4 }
 0x120   :  { %s393_s7 = smov [#allocation4]   ;;  %s394_s9 = smov [#allocation6]  }
 0x121   :  { %v158_v34 = vrot.slane %v157_v32, 2  ;;  %v165_v35 = vadd.f32 %v164_v33, %v163_v30  ;;  %s187_s8 = sshll.u32 %s393_s7, 4  ;;  %s197_s10 = sshll.u32 %s394_s9, 4  ;;  %s188_s8 = int_to_ptr.vmem [resolvable:$true] %s187_s8  ;;  %s506_s10 = int_to_ptr.vmem [resolvable:$true] %s197_s10 }
 0x122   :  { %s341_s2 = scalar_lea.vmem %s188_s8, 16  ;;  %s345_s11 = scalar_lea.vmem %s188_s8, 32 }
 0x123   :  { %v159_v36 = vadd.f32 %v158_v34, %v157_v32  ;;  %v166_v37 = vrot.slane %v165_v35, 2  ;;  %p342_p8 = scmp.ne.s32.totalorder %s188_s8, %s341_s2  ;;  %p346_p9 = scmp.lt.s32.totalorder %s188_s8, %s188_s8 }
 0x124   :  { %p347_p10 = scmp.lt.s32.totalorder %s345_s11, %s341_s2 }
 0x125   :  { %v160_v38 = vrot.slane %v159_v36, 1  ;;  %v167_v39 = vadd.f32 %v166_v37, %v165_v35 }
 0x126   :  { %p348_p11 = por %p347_p10, %p346_p9 }
 0x127   :  { %v161_v40 = vadd.f32 %v160_v38, %v159_v36  ;;  %v168_v41 = vrot.slane %v167_v39, 1 }
 0x128   :  { %p349_p12 = pnand %p348_p11, %p342_p8 }
 0x129   :  { %162 = vst [vmem:[#allocation4] sm:$0x1] %v161_v40  ;;  %v169_v42 = vadd.f32 %v168_v41, %v167_v39 }
 0x12a   :  { %352 = shalt.err (!%p349_p12)
}
 0x12b   :  { %s353_s14 = scalar_lea.hbm %s541_s3, 16 }
 0x12c   :  { %p354_p13 = scmp.ne.s32.totalorder %s541_s3, %s353_s14  ;;  %p357_p0 = scmp.lt.u32.totalorder %s353_s14, %s541_s3 }
 0x12e   :  { %p359_p1 = pnand %p357_p0, %p354_p13 }
 0x130   :  { %362 = shalt.err (!%p359_p1)
}
 0x131   :  { %190 = dma.vmem_to_hbm [thread:$0]  %s188_s8, 16, %s541_s3, [#allocation5]   ;;  %170 = vst [vmem:[#allocation6] sm:$0x1] %v169_v42 }
 0x132   :  { %s363_s21 = scalar_lea.vmem %s506_s10, 16  ;;  %s367_s22 = scalar_lea.vmem %s506_s10, 32 }
 0x133   :  { %p364_p2 = scmp.ne.s32.totalorder %s506_s10, %s363_s21  ;;  %p368_p3 = scmp.lt.s32.totalorder %s506_s10, %s506_s10 }
 0x134   :  { %p369_p4 = scmp.lt.s32.totalorder %s367_s22, %s363_s21 }
 0x136   :  { %p370_p5 = por %p369_p4, %p368_p3 }
 0x138   :  { %p371_p6 = pnand %p370_p5, %p364_p2 }
 0x13a   :  { %374 = shalt.err (!%p371_p6)
}
 0x13b   :  { %s375_s25 = scalar_lea.hbm %s542_s4, 16 }
 0x13c   :  { %p376_p7 = scmp.ne.s32.totalorder %s542_s4, %s375_s25  ;;  %p379_p8 = scmp.lt.u32.totalorder %s375_s25, %s542_s4 }
 0x13e   :  { %p381_p9 = pnand %p379_p8, %p376_p7 }
 0x140   :  { %384 = shalt.err (!%p381_p9)
}
 0x141   :  { %200 = dma.vmem_to_hbm [thread:$0]  %s506_s10, 16, %s542_s4, [#allocation5]  }
 0x142   :  { %385 = dma.done.wait [#allocation3], 128  }
 0x143   :  { %386 = vsyncadd [#allocation3], 4294967168 }
 0x144   :  { %387 = dma.done.wait [#allocation5], 32  }
 0x145   :  { %388 = vsyncadd [#allocation5], 4294967264 }
 0x146   :  { %210 = vsyncpa [#allocation3], 1 }
 0x147   :  { %211 = vsyncpa [#allocation5], 1 }

</bundles_post_ra>
